<compile_context>
chip_gen: v7x
topology: tpu7x:2x2x1
jax: 0.10.0
libtpu: 0.0.40
codegen_flags: <defaults>
</compile_context>

<pallas_src>
import math

import jax
import jax.numpy as jnp
import numpy as np
from jax import lax
from jax.experimental import pallas as pl
from jax.experimental.pallas import tpu as pltpu

LABEL2ID = {
    "O": 0, "B-PERSON": 1, "I-PERSON": 2, "B-ORG": 3,
    "I-ORG": 4, "B-LOC": 5, "I-LOC": 6, "MISC": 7,
}

LANE = 128          # lane-block width: padded label dim & per-matmul RHS blocks
NEG_BIG = -1e9      # bias for padded label columns (keeps argmax in 0..L-1)


def make_kernel(S, H, num_heads, head_size, b_person_id):
    scale = 1.0 / math.sqrt(head_size)

    def kernel(x_ref, w_ref, wo_ref, vec_ref, msk_ref, tbl_ref, out_ref):
        x = x_ref[...]                                           # [S, H]

        # Fused projection, one MXU push (N=256):
        #   lanes   0:128 -> [ Q | 0 ]            (LHS of the score matmul)
        #   lanes 128:256 -> [ K | V | 0 ]        (source of the attention RHS)
        pack = (jnp.dot(x, w_ref[:, 0:2 * LANE],
                        preferred_element_type=jnp.float32)
                + vec_ref[0:1, :])                               # [S, 256]
        q_blk = pack[:, 0:LANE]                                  # Q at lanes 0:H
        kv_blk = pack[:, LANE:2 * LANE]                          # K at 0:H, V at H:2H

        # Tile K|V along sublanes once; placement masks (precomputed) turn it
        # into the block-diagonal RHS for all heads at once.
        kv_tiled = jnp.concatenate([kv_blk] * num_heads, axis=0)  # [nh*S, 128]
        rhs_k = kv_tiled * msk_ref[0]          # K_h^T blocks at lanes h*d:(h+1)*d
        rhs_v = kv_tiled * msk_ref[1]          # V_h  blocks at lanes H+h*d:H+(h+1)*d

        # scores[i, h*S+j] = Q_h[i] . K_h[j]  -- one MXU push, contract last dims.
        scores = lax.dot_general(q_blk, rhs_k, (((1,), (1,)), ((), ())),
                                 preferred_element_type=jnp.float32)  # [S, nh*S]
        # PyTorch order: (+pos_bias) then /sqrt(d) then +dist_mask (tables pre-tiled).
        scores = (scores + tbl_ref[0]) * scale + tbl_ref[1]

        # Block-wise softmax: one shared row max (exact — shift-invariant per
        # head block), exp on the EUP, per-head denominators via the MXU.
        m = jnp.max(scores, axis=-1, keepdims=True)
        e = jnp.exp(scores - m)
        denom = jnp.dot(e, msk_ref[2], preferred_element_type=jnp.float32)  # [S,128]
        ctx = jnp.dot(e, rhs_v, preferred_element_type=jnp.float32) / denom  # [S,128]
        # dropout(0.1) on attention probs is the eval-mode identity.

        # Output projection straight from the 128-wide ctx (Wo sits at rows H:2H,
        # all other ctx columns are exactly zero) -> no ctx scratch, no slicing.
        proj = (jnp.dot(ctx, wo_ref[...], preferred_element_type=jnp.float32)
                + vec_ref[3:4, 0:H])                             # [S, H]
        resid = x + proj

        # LayerNorm (eps = 1e-5, biased variance).
        mean = jnp.mean(resid, axis=-1, keepdims=True)
        var = jnp.mean((resid - mean) ** 2, axis=-1, keepdims=True)
        ln = ((resid - mean) * lax.rsqrt(var + 1e-5)
              * vec_ref[4:5, 0:H] + vec_ref[5:6, 0:H])

        # Span classifier, lane-dense (labels padded to 128; pad cols -> -1e9).
        span = (jnp.dot(ln, w_ref[:, 2 * LANE:3 * LANE],
                        preferred_element_type=jnp.float32)
                + vec_ref[1:2, 0:LANE])                          # [S, 128]

        # torch.argmax (first max index on ties) over the label axis.
        lab_iota = lax.broadcasted_iota(jnp.int32, (S, LANE), 1)
        rmax = jnp.max(span, axis=-1, keepdims=True)
        argmax_idx = jnp.min(jnp.where(span == rmax, lab_iota, LANE),
                             axis=-1, keepdims=True)             # [S, 1]

        # prev_is_b[row] = (argmax(span[row-1]) == B-PERSON); zero at row 0.
        prev_is_b = (argmax_idx == b_person_id).astype(jnp.float32)
        prev_is_b = pltpu.roll(prev_is_b, shift=1, axis=0)
        row_idx = lax.broadcasted_iota(jnp.int32, (S, 1), 0)
        prev_is_b = jnp.where(row_idx != 0, prev_is_b, 0.0)

        # Entity-bias row is pre-built as onehot(I-PERSON) * 2*entity_bias[I-PERSON].
        out_ref[...] = span + prev_is_b * vec_ref[2:3, 0:LANE]   # lane-dense store

    return kernel


def _build_masks(S, H, num_heads, head_size):
    """[3, nh*S, 128] placement masks:
       [0] K^T block-diag placement (lanes 0:H)   -> scores RHS
       [1] V   block-diag placement (lanes H:2H)  -> context RHS
       [2] denominator broadcast map: block-structured over the ctx lanes
           (H:2H), ones elsewhere (avoids div-by-zero on the zero columns)."""
    nh_s = num_heads * S
    m = np.zeros((3, nh_s, LANE), np.float32)
    m[2, :, :] = 1.0
    m[2, :, H:2 * H] = 0.0
    for h in range(num_heads):
        r0, r1 = h * S, (h + 1) * S
        c0, c1 = h * head_size, (h + 1) * head_size
        m[0, r0:r1, c0:c1] = 1.0
        m[1, r0:r1, H + c0:H + c1] = 1.0
        m[2, r0:r1, H + c0:H + c1] = 1.0
    return jnp.asarray(m)


def cross_attention_span_classifier(seq, params, *, num_heads, max_rel):
    B, S, H = seq.shape
    L = params["ws"].shape[1]
    head_size = H // num_heads
    I_PERSON = LABEL2ID["I-PERSON"]

    # --- weight slab [H, 384], every logical RHS block 128-lane aligned -----
    #   lanes   0:128 : Wq | zeros
    #   lanes 128:256 : Wk | Wv | zeros      (duplicate K/V block, pre-aligned)
    #   lanes 256:384 : Ws | zeros
    w = jnp.zeros((H, 3 * LANE), jnp.float32)
    w = w.at[:, 0:H].set(params["wq"])
    w = w.at[:, LANE:LANE + H].set(params["wk"])
    w = w.at[:, LANE + H:LANE + 2 * H].set(params["wv"])
    w = w.at[:, 2 * LANE:2 * LANE + L].set(params["ws"])

    # Wo placed at rows H:2H to match where the fused context lands.
    wo = jnp.zeros((LANE, H), jnp.float32)
    wo = wo.at[H:2 * H, :].set(params["wo"])

    # --- bias / LN / entity-bias slab [8, 256] -------------------------------
    vec = jnp.zeros((8, 2 * LANE), jnp.float32)
    vec = vec.at[0, 0:H].set(params["bq"][0])                     # pack bias
    vec = vec.at[0, LANE:LANE + H].set(params["bk"][0])
    vec = vec.at[0, LANE + H:LANE + 2 * H].set(params["bv"][0])
    vec = vec.at[1, L:LANE].set(NEG_BIG)                          # padded labels
    vec = vec.at[1, 0:L].set(params["bs"][0])                     # span bias
    vec = vec.at[2, I_PERSON].set(2.0 * params["entity_bias"][I_PERSON])
    vec = vec.at[3, 0:H].set(params["bo"][0])
    vec = vec.at[4, 0:H].set(params["gamma"][0])
    vec = vec.at[5, 0:H].set(params["beta"][0])

    masks = _build_masks(S, H, num_heads, head_size)

    # --- hoisted positional tables, pre-tiled per head: [2, S, nh*S] ---------
    r = jnp.arange(S, dtype=jnp.float32)
    dist = jnp.abs(r[None, :] - r[:, None])
    pos = jnp.exp(-0.1 * jnp.minimum(dist, float(max_rel)))
    tbl = jnp.stack([jnp.tile(pos, (1, num_heads)),
                     jnp.tile(-0.1 * dist, (1, num_heads))])

    kernel = make_kernel(S, H, num_heads, head_size, LABEL2ID["B-PERSON"])

    out = pl.pallas_call(
        kernel,
        grid=(B,),
        in_specs=[
            pl.BlockSpec((None, S, H), lambda b: (b, 0, 0)),                 # x
            pl.BlockSpec((H, 3 * LANE), lambda b: (0, 0)),                   # w slab
            pl.BlockSpec((LANE, H), lambda b: (0, 0)),                       # wo
            pl.BlockSpec((8, 2 * LANE), lambda b: (0, 0)),                   # vec slab
            pl.BlockSpec((3, num_heads * S, LANE), lambda b: (0, 0, 0)),     # masks
            pl.BlockSpec((2, S, num_heads * S), lambda b: (0, 0, 0)),        # tables
        ],
        out_specs=pl.BlockSpec((None, S, LANE), lambda b: (b, 0, 0)),
        out_shape=jax.ShapeDtypeStruct((B, S, LANE), jnp.float32),
        compiler_params=pltpu.CompilerParams(
            dimension_semantics=("parallel",)),                  # v7x: 2nd TC
    )(seq, w, wo, vec, masks, tbl)

    return out[:, :, :L]


def reference(seq, params, *, num_heads, max_rel):
    """Pure-JAX reference mirroring the PyTorch forward."""
    B, S, H = seq.shape
    d = H // num_heads
    L = params["ws"].shape[1]
    x = seq
    q = x @ params["wq"] + params["bq"][0]
    k = x @ params["wk"] + params["bk"][0]
    v = x @ params["wv"] + params["bv"][0]

    def heads(t):
        return t.reshape(B, S, num_heads, d).transpose(0, 2, 1, 3)

    Q, K, V = heads(q), heads(k), heads(v)
    scores = jnp.einsum("bhqd,bhkd->bhqk", Q, K)
    r = jnp.arange(S, dtype=jnp.float32)
    dist = jnp.abs(r[None, :] - r[:, None])
    pos = jnp.exp(-0.1 * jnp.clip(dist, 0.0, float(max_rel)))
    scores = (scores + pos) / math.sqrt(d) + (-0.1 * dist)
    probs = jax.nn.softmax(scores, axis=-1)
    ctx = jnp.einsum("bhqk,bhkd->bhqd", probs, V)
    ctx = ctx.transpose(0, 2, 1, 3).reshape(B, S, H)
    proj = ctx @ params["wo"] + params["bo"][0]
    resid = x + proj
    mean = resid.mean(-1, keepdims=True)
    var = ((resid - mean) ** 2).mean(-1, keepdims=True)
    ln = (resid - mean) / jnp.sqrt(var + 1e-5) * params["gamma"][0] + params["beta"][0]
    span = ln @ params["ws"] + params["bs"][0]

    prev_arg = jnp.argmax(span[:, :-1, :], axis=-1)
    cond = (prev_arg == LABEL2ID["B-PERSON"]).astype(jnp.float32)
    cond = jnp.pad(cond, ((0, 0), (1, 0)))
    add = (cond[:, :, None]
           * (jnp.arange(L)[None, None, :] == LABEL2ID["I-PERSON"])
           * 2.0 * params["entity_bias"][LABEL2ID["I-PERSON"]])
    return span + add


if __name__ == "__main__":
    B, S, H = 2, 8, 32
    num_heads, max_rel = 4, 5
    L = len(LABEL2ID)      # num_labels = 8

    key = jax.random.PRNGKey(0)
    ks = jax.random.split(key, 16)

    def lin(kw, kb, fan_in, fan_out):
        w = jax.random.normal(kw, (fan_in, fan_out), jnp.float32) * 0.05
        b = jax.random.normal(kb, (1, fan_out), jnp.float32) * 0.01
        return w, b

    wq, bq = lin(ks[0], ks[1], H, H)
    wk, bk = lin(ks[2], ks[3], H, H)
    wv, bv = lin(ks[4], ks[5], H, H)
    wo, bo = lin(ks[6], ks[7], H, H)
    ws, bs = lin(ks[8], ks[9], H, L)
    params = dict(
        wq=wq, bq=bq, wk=wk, bk=bk, wv=wv, bv=bv, wo=wo, bo=bo,
        gamma=jnp.ones((1, H), jnp.float32),
        beta=jnp.zeros((1, H), jnp.float32),
        ws=ws, bs=bs,
        # nonzero so the B-PERSON -> I-PERSON conditional path is exercised
        entity_bias=jax.random.normal(ks[11], (L,), jnp.float32) * 0.5,
    )

    seq = jax.random.normal(ks[10], (B, S, H), jnp.float32)

    out = cross_attention_span_classifier(
        seq, params, num_heads=num_heads, max_rel=max_rel)
    out = jax.block_until_ready(out)

    ref = reference(seq, params, num_heads=num_heads, max_rel=max_rel)
    np.testing.assert_allclose(np.asarray(out), np.asarray(ref),
                               rtol=1e-4, atol=1e-4)
    print("KERNEL_OK")
</pallas_src>

<mosaic_0001>
module attributes {stable_mosaic.version = 11 : i64} {
  func.func @kernel(%arg0: i32, %arg1: memref<1x8x32xf32, #tpu.memory_space<vmem>>, %arg2: memref<32x384xf32, #tpu.memory_space<vmem>>, %arg3: memref<128x32xf32, #tpu.memory_space<vmem>>, %arg4: memref<8x256xf32, #tpu.memory_space<vmem>>, %arg5: memref<3x32x128xf32, #tpu.memory_space<vmem>>, %arg6: memref<2x8x32xf32, #tpu.memory_space<vmem>>, %arg7: memref<1x8x128xf32, #tpu.memory_space<vmem>>) attributes {dimension_semantics = [#tpu.dimension_semantics<parallel>], iteration_bounds = array<i64: 2>, scalar_prefetch = 0 : i64, scratch_operands = 0 : i64, tpu.core_type = #tpu.core_type<tc>, window_params = [{transform_indices = @transform_0, window_bounds = array<i64: 1, 8, 32>}, {pipeline_mode = #tpu.pipeline_mode<synchronous>, transform_indices = @transform_1, window_bounds = array<i64: 32, 384>}, {pipeline_mode = #tpu.pipeline_mode<synchronous>, transform_indices = @transform_2, window_bounds = array<i64: 128, 32>}, {pipeline_mode = #tpu.pipeline_mode<synchronous>, transform_indices = @transform_3, window_bounds = array<i64: 8, 256>}, {pipeline_mode = #tpu.pipeline_mode<synchronous>, transform_indices = @transform_4, window_bounds = array<i64: 3, 32, 128>}, {pipeline_mode = #tpu.pipeline_mode<synchronous>, transform_indices = @transform_5, window_bounds = array<i64: 2, 8, 32>}, {transform_indices = @transform_6, window_bounds = array<i64: 1, 8, 128>}]} {
    %c0 = arith.constant 0 : index
    %c0_0 = arith.constant 0 : index
    %c0_1 = arith.constant 0 : index
    %0 = vector.load %arg1[%c0, %c0_0, %c0_1] : memref<1x8x32xf32, #tpu.memory_space<vmem>>, vector<1x8x32xf32>
    %1 = vector.shape_cast %0 : vector<1x8x32xf32> to vector<8x32xf32>
    %c0_2 = arith.constant 0 : index
    %c0_3 = arith.constant 0 : index
    %2 = vector.load %arg2[%c0_2, %c0_3] : memref<32x384xf32, #tpu.memory_space<vmem>>, vector<32x256xf32>
    %cst = arith.constant dense<0.000000e+00> : vector<8x256xf32>
    %3 = tpu.matmul %1, %2, %cst {dimension_numbers = #tpu.dot_dimension_numbers<[1], [0], [0], [1], [0, 0, 1, 1], [], []>} : vector<8x32xf32>, vector<32x256xf32>, vector<8x256xf32> -> vector<8x256xf32>
    %c0_4 = arith.constant 0 : index
    %c0_5 = arith.constant 0 : index
    %4 = vector.load %arg4[%c0_4, %c0_5] : memref<8x256xf32, #tpu.memory_space<vmem>>, vector<1x256xf32>
    %5 = vector.broadcast %4 : vector<1x256xf32> to vector<8x256xf32>
    %6 = arith.addf %3, %5 : vector<8x256xf32>
    %7 = vector.extract_strided_slice %6 {offsets = [0, 0], sizes = [8, 128], strides = [1, 1]} : vector<8x256xf32> to vector<8x128xf32>
    %8 = vector.extract_strided_slice %6 {offsets = [0, 128], sizes = [8, 128], strides = [1, 1]} : vector<8x256xf32> to vector<8x128xf32>
    %9 = tpu.concatenate %8, %8, %8, %8 in 0 : vector<8x128xf32>, vector<8x128xf32>, vector<8x128xf32>, vector<8x128xf32> -> vector<32x128xf32>
    %c0_6 = arith.constant 0 : index
    %c0_7 = arith.constant 0 : index
    %c0_8 = arith.constant 0 : index
    %10 = vector.load %arg5[%c0_6, %c0_7, %c0_8] : memref<3x32x128xf32, #tpu.memory_space<vmem>>, vector<1x32x128xf32>
    %11 = vector.shape_cast %10 : vector<1x32x128xf32> to vector<32x128xf32>
    %12 = arith.mulf %9, %11 : vector<32x128xf32>
    %c1 = arith.constant 1 : index
    %c0_9 = arith.constant 0 : index
    %c0_10 = arith.constant 0 : index
    %13 = vector.load %arg5[%c1, %c0_9, %c0_10] : memref<3x32x128xf32, #tpu.memory_space<vmem>>, vector<1x32x128xf32>
    %14 = vector.shape_cast %13 : vector<1x32x128xf32> to vector<32x128xf32>
    %15 = arith.mulf %9, %14 : vector<32x128xf32>
    %cst_11 = arith.constant dense<0.000000e+00> : vector<8x32xf32>
    %16 = tpu.matmul %7, %12, %cst_11 {dimension_numbers = #tpu.dot_dimension_numbers<[1], [1], [0], [0], [0, 0, 1, 0], [], []>} : vector<8x128xf32>, vector<32x128xf32>, vector<8x32xf32> -> vector<8x32xf32>
    %c0_12 = arith.constant 0 : index
    %c0_13 = arith.constant 0 : index
    %c0_14 = arith.constant 0 : index
    %17 = vector.load %arg6[%c0_12, %c0_13, %c0_14] : memref<2x8x32xf32, #tpu.memory_space<vmem>>, vector<1x8x32xf32>
    %18 = vector.shape_cast %17 : vector<1x8x32xf32> to vector<8x32xf32>
    %19 = arith.addf %16, %18 : vector<8x32xf32>
    %cst_15 = arith.constant 0.353553385 : f32
    %20 = vector.broadcast %cst_15 : f32 to vector<8x32xf32>
    %21 = arith.mulf %19, %20 : vector<8x32xf32>
    %c1_16 = arith.constant 1 : index
    %c0_17 = arith.constant 0 : index
    %c0_18 = arith.constant 0 : index
    %22 = vector.load %arg6[%c1_16, %c0_17, %c0_18] : memref<2x8x32xf32, #tpu.memory_space<vmem>>, vector<1x8x32xf32>
    %23 = vector.shape_cast %22 : vector<1x8x32xf32> to vector<8x32xf32>
    %24 = arith.addf %21, %23 : vector<8x32xf32>
    %cst_19 = arith.constant dense<0xFF800000> : vector<8xf32>
    %25 = vector.multi_reduction <maximumf>, %24, %cst_19 [1] : vector<8x32xf32> to vector<8xf32>
    %26 = vector.shape_cast %25 : vector<8xf32> to vector<8x1xf32>
    %27 = vector.broadcast %26 : vector<8x1xf32> to vector<8x32xf32>
    %28 = arith.subf %24, %27 : vector<8x32xf32>
    %29 = math.exp %28 : vector<8x32xf32>
    %c2 = arith.constant 2 : index
    %c0_20 = arith.constant 0 : index
    %c0_21 = arith.constant 0 : index
    %30 = vector.load %arg5[%c2, %c0_20, %c0_21] : memref<3x32x128xf32, #tpu.memory_space<vmem>>, vector<1x32x128xf32>
    %31 = vector.shape_cast %30 : vector<1x32x128xf32> to vector<32x128xf32>
    %cst_22 = arith.constant dense<0.000000e+00> : vector<8x128xf32>
    %32 = tpu.matmul %29, %31, %cst_22 {dimension_numbers = #tpu.dot_dimension_numbers<[1], [0], [0], [1], [0, 0, 1, 1], [], []>} : vector<8x32xf32>, vector<32x128xf32>, vector<8x128xf32> -> vector<8x128xf32>
    %cst_23 = arith.constant dense<0.000000e+00> : vector<8x128xf32>
    %33 = tpu.matmul %29, %15, %cst_23 {dimension_numbers = #tpu.dot_dimension_numbers<[1], [0], [0], [1], [0, 0, 1, 1], [], []>} : vector<8x32xf32>, vector<32x128xf32>, vector<8x128xf32> -> vector<8x128xf32>
    %34 = arith.divf %33, %32 : vector<8x128xf32>
    %c0_24 = arith.constant 0 : index
    %c0_25 = arith.constant 0 : index
    %35 = vector.load %arg3[%c0_24, %c0_25] : memref<128x32xf32, #tpu.memory_space<vmem>>, vector<128x32xf32>
    %cst_26 = arith.constant dense<0.000000e+00> : vector<8x32xf32>
    %36 = tpu.matmul %34, %35, %cst_26 {dimension_numbers = #tpu.dot_dimension_numbers<[1], [0], [0], [1], [0, 0, 1, 1], [], []>} : vector<8x128xf32>, vector<128x32xf32>, vector<8x32xf32> -> vector<8x32xf32>
    %c3 = arith.constant 3 : index
    %c0_27 = arith.constant 0 : index
    %37 = vector.load %arg4[%c3, %c0_27] : memref<8x256xf32, #tpu.memory_space<vmem>>, vector<1x32xf32>
    %38 = vector.broadcast %37 : vector<1x32xf32> to vector<8x32xf32>
    %39 = arith.addf %36, %38 : vector<8x32xf32>
    %40 = arith.addf %1, %39 : vector<8x32xf32>
    %cst_28 = arith.constant dense<0.000000e+00> : vector<8xf32>
    %41 = vector.multi_reduction <add>, %40, %cst_28 [1] : vector<8x32xf32> to vector<8xf32>
    %42 = vector.shape_cast %41 : vector<8xf32> to vector<8x1xf32>
    %cst_29 = arith.constant 3.200000e+01 : f32
    %43 = vector.broadcast %cst_29 : f32 to vector<8x1xf32>
    %44 = arith.divf %42, %43 : vector<8x1xf32>
    %45 = vector.broadcast %44 : vector<8x1xf32> to vector<8x32xf32>
    %46 = arith.subf %40, %45 : vector<8x32xf32>
    %47 = arith.mulf %46, %46 : vector<8x32xf32>
    %cst_30 = arith.constant dense<0.000000e+00> : vector<8xf32>
    %48 = vector.multi_reduction <add>, %47, %cst_30 [1] : vector<8x32xf32> to vector<8xf32>
    %49 = vector.shape_cast %48 : vector<8xf32> to vector<8x1xf32>
    %cst_31 = arith.constant 3.200000e+01 : f32
    %50 = vector.broadcast %cst_31 : f32 to vector<8x1xf32>
    %51 = arith.divf %49, %50 : vector<8x1xf32>
    %52 = vector.broadcast %44 : vector<8x1xf32> to vector<8x32xf32>
    %53 = arith.subf %40, %52 : vector<8x32xf32>
    %cst_32 = arith.constant 9.99999974E-6 : f32
    %54 = vector.broadcast %cst_32 : f32 to vector<8x1xf32>
    %55 = arith.addf %51, %54 : vector<8x1xf32>
    %56 = math.rsqrt %55 : vector<8x1xf32>
    %57 = vector.broadcast %56 : vector<8x1xf32> to vector<8x32xf32>
    %58 = arith.mulf %53, %57 : vector<8x32xf32>
    %c4 = arith.constant 4 : index
    %c0_33 = arith.constant 0 : index
    %59 = vector.load %arg4[%c4, %c0_33] : memref<8x256xf32, #tpu.memory_space<vmem>>, vector<1x32xf32>
    %60 = vector.broadcast %59 : vector<1x32xf32> to vector<8x32xf32>
    %61 = arith.mulf %58, %60 : vector<8x32xf32>
    %c5 = arith.constant 5 : index
    %c0_34 = arith.constant 0 : index
    %62 = vector.load %arg4[%c5, %c0_34] : memref<8x256xf32, #tpu.memory_space<vmem>>, vector<1x32xf32>
    %63 = vector.broadcast %62 : vector<1x32xf32> to vector<8x32xf32>
    %64 = arith.addf %61, %63 : vector<8x32xf32>
    %c0_35 = arith.constant 0 : index
    %c256 = arith.constant 256 : index
    %65 = vector.load %arg2[%c0_35, %c256] : memref<32x384xf32, #tpu.memory_space<vmem>>, vector<32x128xf32>
    %cst_36 = arith.constant dense<0.000000e+00> : vector<8x128xf32>
    %66 = tpu.matmul %64, %65, %cst_36 {dimension_numbers = #tpu.dot_dimension_numbers<[1], [0], [0], [1], [0, 0, 1, 1], [], []>} : vector<8x32xf32>, vector<32x128xf32>, vector<8x128xf32> -> vector<8x128xf32>
    %c1_37 = arith.constant 1 : index
    %c0_38 = arith.constant 0 : index
    %67 = vector.load %arg4[%c1_37, %c0_38] : memref<8x256xf32, #tpu.memory_space<vmem>>, vector<1x128xf32>
    %68 = vector.broadcast %67 : vector<1x128xf32> to vector<8x128xf32>
    %69 = arith.addf %66, %68 : vector<8x128xf32>
    %70 = tpu.iota {dimensions = array<i32: 1>} : vector<8x128xi32>
    %cst_39 = arith.constant dense<0xFF800000> : vector<8xf32>
    %71 = vector.multi_reduction <maximumf>, %69, %cst_39 [1] : vector<8x128xf32> to vector<8xf32>
    %72 = vector.shape_cast %71 : vector<8xf32> to vector<8x1xf32>
    %73 = vector.broadcast %72 : vector<8x1xf32> to vector<8x128xf32>
    %74 = arith.cmpf oeq, %69, %73 : vector<8x128xf32>
    %c128_i32 = arith.constant 128 : i32
    %75 = vector.broadcast %c128_i32 : i32 to vector<8x128xi32>
    %76 = arith.select %74, %70, %75 : vector<8x128xi1>, vector<8x128xi32>
    %cst_40 = arith.constant dense<2147483647> : vector<8xi32>
    %77 = vector.multi_reduction <minsi>, %76, %cst_40 [1] : vector<8x128xi32> to vector<8xi32>
    %78 = vector.shape_cast %77 : vector<8xi32> to vector<8x1xi32>
    %c1_i32 = arith.constant 1 : i32
    %79 = vector.broadcast %c1_i32 : i32 to vector<8x1xi32>
    %80 = arith.cmpi eq, %78, %79 : vector<8x1xi32>
    %81 = arith.extui %80 : vector<8x1xi1> to vector<8x1xi32>
    %82 = arith.sitofp %81 : vector<8x1xi32> to vector<8x1xf32>
    %c1_i32_41 = arith.constant 1 : i32
    %83 = tpu.dynamic_rotate %82 by %c1_i32_41 dim 0 : vector<8x1xf32>, i32 -> vector<8x1xf32>
    %84 = tpu.iota {dimensions = array<i32: 0>} : vector<8x1xi32>
    %c0_i32 = arith.constant 0 : i32
    %85 = vector.broadcast %c0_i32 : i32 to vector<8x1xi32>
    %86 = arith.cmpi ne, %84, %85 : vector<8x1xi32>
    %cst_42 = arith.constant 0.000000e+00 : f32
    %87 = vector.broadcast %cst_42 : f32 to vector<8x1xf32>
    %88 = arith.select %86, %83, %87 : vector<8x1xi1>, vector<8x1xf32>
    %c2_43 = arith.constant 2 : index
    %c0_44 = arith.constant 0 : index
    %89 = vector.load %arg4[%c2_43, %c0_44] : memref<8x256xf32, #tpu.memory_space<vmem>>, vector<1x128xf32>
    %90 = vector.broadcast %88 : vector<8x1xf32> to vector<8x128xf32>
    %91 = vector.broadcast %89 : vector<1x128xf32> to vector<8x128xf32>
    %92 = arith.mulf %90, %91 : vector<8x128xf32>
    %93 = arith.addf %69, %92 : vector<8x128xf32>
    %c0_45 = arith.constant 0 : index
    %c0_46 = arith.constant 0 : index
    %c0_47 = arith.constant 0 : index
    %94 = vector.load %arg7[%c0_45, %c0_46, %c0_47] : memref<1x8x128xf32, #tpu.memory_space<vmem>>, vector<1x8x128xf32>
    %95 = vector.shape_cast %94 : vector<1x8x128xf32> to vector<8x128xf32>
    %96 = vector.shape_cast %93 : vector<8x128xf32> to vector<1x8x128xf32>
    tpu.vector_store %arg7[%c0_45, %c0_46, %c0_47], %96 {strides = array<i32>} : memref<1x8x128xf32, #tpu.memory_space<vmem>>, vector<1x8x128xf32>,
    return
  }
  func.func @transform_0(%arg0: i32) -> (i32, i32, i32) {
    %c0_i32 = arith.constant 0 : i32
    %c0_i32_0 = arith.constant 0 : i32
    %c0_i32_1 = arith.constant 0 : i32
    return %arg0, %c0_i32, %c0_i32_0 : i32, i32, i32
  }
  func.func @transform_1(%arg0: i32) -> (i32, i32) {
    %c0_i32 = arith.constant 0 : i32
    %c0_i32_0 = arith.constant 0 : i32
    %c0_i32_1 = arith.constant 0 : i32
    return %c0_i32, %c0_i32_0 : i32, i32
  }
  func.func @transform_2(%arg0: i32) -> (i32, i32) {
    %c0_i32 = arith.constant 0 : i32
    %c0_i32_0 = arith.constant 0 : i32
    %c0_i32_1 = arith.constant 0 : i32
    return %c0_i32, %c0_i32_0 : i32, i32
  }
  func.func @transform_3(%arg0: i32) -> (i32, i32) {
    %c0_i32 = arith.constant 0 : i32
    %c0_i32_0 = arith.constant 0 : i32
    %c0_i32_1 = arith.constant 0 : i32
    return %c0_i32, %c0_i32_0 : i32, i32
  }
  func.func @transform_4(%arg0: i32) -> (i32, i32, i32) {
    %c0_i32 = arith.constant 0 : i32
    %c0_i32_0 = arith.constant 0 : i32
    %c0_i32_1 = arith.constant 0 : i32
    %c0_i32_2 = arith.constant 0 : i32
    return %c0_i32, %c0_i32_0, %c0_i32_1 : i32, i32, i32
  }
  func.func @transform_5(%arg0: i32) -> (i32, i32, i32) {
    %c0_i32 = arith.constant 0 : i32
    %c0_i32_0 = arith.constant 0 : i32
    %c0_i32_1 = arith.constant 0 : i32
    %c0_i32_2 = arith.constant 0 : i32
    return %c0_i32, %c0_i32_0, %c0_i32_1 : i32, i32, i32
  }
  func.func @transform_6(%arg0: i32) -> (i32, i32, i32) {
    %c0_i32 = arith.constant 0 : i32
    %c0_i32_0 = arith.constant 0 : i32
    %c0_i32_1 = arith.constant 0 : i32
    return %arg0, %c0_i32, %c0_i32_0 : i32, i32, i32
  }
}

</mosaic_0001>

<bundles_post_ra>
// kernel: tpu_custom_call.1
= control target key start
LH: loop header
LB: loop body
LE: loop exit
PB: predicated region body
PF: predicated region fallthrough
CT: control target
= control target key end

     0   :  { %11 = vsyncpa [#allocation3], 0  ;;  %s1603_s0 = inlined_call_operand.vmem [shape: f32[2,8,32], index: 0, kind: input, shape index: {}]   ;;  %s1604_s1 = inlined_call_operand.vmem [shape: f32[32,384], index: 1, kind: input, shape index: {}]   ;;  %s1605_s2 = inlined_call_operand.vmem [shape: f32[128,32], index: 2, kind: input, shape index: {}]   ;;  %s1606_s3 = inlined_call_operand.vmem [shape: f32[8,256], index: 3, kind: input, shape index: {}]   ;;  %s1607_s4 = inlined_call_operand.hbm [shape: f32[3,32,128], index: 4, kind: input, shape index: {}]   ;;  %s1608_s5 = inlined_call_operand.vmem [shape: f32[2,8,32], index: 5, kind: input, shape index: {}]   ;;  %s1609_s6 = inlined_call_operand.hbm [shape: f32[2,8,128], index: 6, kind: output, shape index: {}]  }
   0x1   :  { %12 = vsyncpa [#allocation4], 0 }
   0x2   :  { %14 = vsyncpa [#allocation4 + $0x1], 0  ;;  %s1304_s21 = smov 0   ;;  %s1306_s22 = smov 0  }
   0x3   :  { %s1308_s23 = smov 0   ;;  %s1310_s24 = smov 0  }
   0x4 LB: > { %s1325_s25 = sadd.s32 4294967295, %s1259_s24   ;;  %s912_s26 = sadd.s32 4294967294, %s1259_s24   ;;  %s1259_s24 = sphi %s1310_s24, %s1625_s24   ;;  %s1255_s23 = sphi %s1308_s23, %s1624_s23   ;;  %s1251_s22 = sphi %s1306_s22, %s1623_s22   ;;  %s1247_s21 = sphi %s1304_s21, %s1622_s21  }
   0x5   : > { %s1329_s27 = sadd.s32 1, %s1259_s24   ;;  %s158_s28 = sadd.s32 1, %s1255_s23 }
   0x6   : > { %s155_s29 = ssub.s32 %s1259_s24, %s1329_s27  ;;  %p168_p0 = scmp.ne.s32.totalorder %s1255_s23, %s1251_s22 }
   0x7   : > { %p156_p1 = scmp.eq.s32.totalorder %s155_s29, 0  ;;  %p169_p2 = scmp.eq.s32.totalorder %s1325_s25, 1 }
   0x8   : > { %p174_p3 = scmp.ne.s32.totalorder %s1251_s22, %s1247_s21  ;;  %p175_p4 = scmp.eq.s32.totalorder %s912_s26, 1 }
   0x9   : > { %s1340_s30 = scalar_select %p156_p1, %s1255_s23, %s158_s28  }
   0xa   : > { %p1342_p5 = por %p169_p2, %p168_p0  ;;  %p1346_p6 = por %p175_p4, %p174_p3 }
   0xb   : > { %p913_p7 = scmp.ge.s32.totalorder %s1259_s24, 1  ;;  %p182_p8 = scmp.lt.s32.totalorder %s1259_s24, 3 }
   0xc   : > { %s1613_s7 = scalar_select %p1342_p5, 1, 0 }
   0xd   : > { %s1614_s8 = scalar_select %p1346_p6, 1, 0 }
   0xe   : > { %p1610_p9 = scmp.eq.s32.totalorder %s1325_s25, 0  ;;  %p1353_p10 = pnand %p913_p7, %p182_p8 }
   0xf   : > { %s1261_s10 = smov [#allocation2]   ;;  %s1165_s15 = scalar_lea.hbm %s1607_s4, 1536 }
  0x10   : > { %s1615_s9 = scalar_select %p1353_p10, 1, 0 }
  0x11   : > { %s203_s11 = sshll.u32 %s1261_s10, 4  ;;  %p1108_p11 = pneg %p1353_p10  ;;  %s204_s11 = int_to_ptr.vmem [resolvable:$true] %s203_s11 }
  0x12   : > { %p1166_p13 = scmp.ne.s32.totalorder %s1607_s4, %s1165_s15  ;;  %p1172_p3 = scmp.lt.u32.totalorder %s1165_s15, %s1607_s4 }
  0x13   : > { %p1361_p12 = pnand %p1610_p9, %p1108_p11 }
  0x15   : > { %p1167_p0 = pneg %p1361_p12 }
  0x17   : > { %p1168_p1 = pnand %p1167_p0, %p1166_p13 }
  0x19   : > { %p1169_p2 = pneg %p1168_p1 }
  0x1b   : > { %p1174_p4 = pnand %p1172_p3, %p1169_p2 }
  0x1d   : > { %1177 = shalt.err (!%p1174_p4)
}
  0x1e   : > { %s1178_s20 = scalar_lea.vmem %s204_s11, 1536  ;;  %p1186_p9 = scmp.lt.s32.totalorder %s204_s11, %s204_s11 }
  0x1f   : > { %p1179_p7 = scmp.ne.s32.totalorder %s204_s11, %s1178_s20  ;;  %p1187_p6 = scmp.lt.s32.totalorder %s1178_s20, %s1178_s20 }
  0x21   : > { %p1181_p8 = pnand %p1179_p7, %p1167_p0  ;;  %p1188_p5 = por %p1187_p6, %p1186_p9 }
  0x23   : > { %p1182_p11 = pneg %p1181_p8 }
  0x25   : > { %p1189_p10 = pnand %p1188_p5, %p1182_p11 }
  0x27   : > { %1192 = shalt.err (!%p1189_p10)
}
  0x28   : > { %s1262_s26 = smov 128   ;;  %s1263_s28 = smov 8  }
  0x29   : > { %1111 = dma.hbm_to_vmem [thread:$0]  (!%p1361_p12), %s1607_s4, 1536, %s204_s11, [#allocation3], %s1262_s26, %s1262_s26, %s1263_s28  }
  0x2a   : > { %p1617_p13 = scmp.ne.s32.totalorder %s1615_s9, 0 }
  0x2b   : > { %p1618_p1 = scmp.eq.s32.totalorder (!%p1617_p13), %s1325_s25, 0 }
  0x2c   : > { %229 = sbr.rel (%p1617_p13) target bundleno = 2230 (0x8b6), region = 44 }
  0x33   : > { %1238 = dma.done.wait (%p1618_p1), [#allocation3], 1536   ;;  %p1619_p0 = pmov %p1618_p1 }
  0x34   : > { %v1264_v0 = vmov 0.0   ;;  %p258_p5 = scmp.lt.s32.totalorder %s1325_s25, 1  ;;  %v264_v1 = vld [vmem:[%s1604_s1 + $0x8] sm:$0xff]  ;;  %v266_v2 = vld [vmem:[%s1604_s1 + $0x20] sm:$0xff]  ;;  %v265_v5 = vld [vmem:[%s1604_s1 + $0x18] sm:$0xff]  ;;  %vm283_vm0 = vcmask 261120   ;;  %v273_v15 = vlaneseq }
  0x35   : > { %1240 = vsyncadd (%p1619_p0), [#allocation3], 4294965760  ;;  %351 = vmatprep.mubr.f32.mxu0 %v1264_v0  ;;  %v263_v3 = vld [vmem:[%s1604_s1] sm:$0xff]  ;;  %v1046_v4 = vpack.c.bf16 %v266_v2, %v264_v1  ;;  %v268_v6 = vld [vmem:[%s1604_s1 + $0x38] sm:$0xff]  ;;  %v1265_v14 = vmov 0.0|0.0   ;;  %vm1266_vm1 = vmmov 0  }
  0x36   : > { %s259_s12 = scalar_select %p258_p5, %s1325_s25, 1  ;;  %v270_v7 = vld [vmem:[%s1604_s1 + $0x50] sm:$0xff]  ;;  %v1048_v8 = vpack.c.bf16 %v265_v5, %v263_v3  ;;  %v269_v11 = vld [vmem:[%s1604_s1 + $0x48] sm:$0xff]  ;;  %1054 = vmatprep.subr.bf16.mxu1 %v1265_v14  ;;  %975 = vmatprep.mubr.msk.f32.mxu1 %vm1266_vm1, %v1264_v0  ;;  %v1428_v16 = vshrl.u32 %v273_v15, 7  ;;  %v358_v22 = vld [vmem:[#allocation2] sm:$0xff] }
  0x37   : > { %v1050_v9 = vpack.c.bf16 %v270_v7, %v268_v6  ;;  %v267_v10 = vld [vmem:[%s1604_s1 + $0x30] sm:$0xff]  ;;  %1047 = vmatprep.subr.bf16.mxu0 %v1046_v4  ;;  %v271_v18 = vld [vmem:[%s1606_s3] ss:$8 sm:$0x3]  ;;  %v361_v29 = vld [vmem:[#allocation2 + $0x18] sm:$0xff]  ;;  %s255_s13 = sand.u32 1, %s1251_s22  }
  0x38   : > { %s919_s11 = sshll.u32 %s259_s12, 3  ;;  %1049 = vmatpush1.bf16.msra.mxu0 %v1048_v8  ;;  %v1052_v12 = vpack.c.bf16 %v269_v11, %v267_v10  ;;  %v279_v17 = vsub.s32 1, %v1428_v16  ;;  %v359_v23 = vld [vmem:[#allocation2 + $0x8] sm:$0xff]  ;;  %v360_v28 = vld [vmem:[#allocation2 + $0x10] sm:$0xff]  ;;  %v275_v32 = vsub.s32 0, %v1428_v16  ;;  %v375_v36 = vld [vmem:[%s1608_s5] sm:$0xff] }
  0x39   : > { %1051 = vmatprep.subr.bf16.mxu0 %v1050_v9  ;;  %s261_s16 = scalar_lea.vmem %s1603_s0, %s919_s11  ;;  %v921_v40 = vld [vmem:[%s1608_s5 + $0x8] sm:$0xff]  ;;  %v457_v44 = vld [vmem:[#allocation2 + $0x40] sm:$0xff]  ;;  %v459_v46 = vld [vmem:[#allocation2 + $0x50] sm:$0xff]  ;;  %vm816_vm5 = vcmp.ne.s32.totalorder %v1428_v16, 0  ;;  %s918_s14 = sshll.u32 %s255_s13, 3 }
  0x3a   : > { %v1417_v13 = vld [vmem:[%s261_s16] sm:$0xff]  ;;  %v280_v19 = vrot.slane %v271_v18, %v279_v17  ;;  %v276_v34 = vrot.slane %v271_v18, %v275_v32  ;;  %v458_v45 = vld [vmem:[#allocation2 + $0x48] sm:$0xff]  ;;  %v460_v48 = vld [vmem:[#allocation2 + $0x58] sm:$0xff]  ;;  %s927_s15 = sshll.u32 %s1325_s25, 7  ;;  %s257_s16 = scalar_lea.vmem [#allocation5], %s918_s14 }
  0x3b   : > { %v1061_v47 = vpack.c.bf16 %v458_v45, %v457_v44  ;;  %v1064_v49 = vpack.c.bf16 %v460_v48, %v459_v46  ;;  %v606_v50 = vld [vmem:[%s1605_s2] sm:$0xff]  ;;  %v607_v51 = vld [vmem:[%s1605_s2 + $0x8] sm:$0xff]  ;;  %v608_v52 = vld [vmem:[%s1605_s2 + $0x10] sm:$0xff]  ;;  %s841_s12 = sshll.u32 %s257_s16, 4  ;;  %s1561_s19 = scalar_lea.hbm %s1609_s6, %s927_s15  ;;  %s1563_s12 = int_to_ptr.vmem [resolvable:$true] %s841_s12 }
  0x3c   : > { %1053 = vmatpush1.bf16.msra.mxu0 %v1052_v12  ;;  %v1073_v53 = vpack.c.bf16 %v607_v51, %v606_v50  ;;  %v609_v54 = vld [vmem:[%s1605_s2 + $0x18] sm:$0xff]  ;;  %v610_v56 = vld [vmem:[%s1605_s2 + $0x20] sm:$0xff]  ;;  %v611_v57 = vld [vmem:[%s1605_s2 + $0x28] sm:$0xff]  ;;  %s828_s20 = scalar_lea.sflag [#allocation4], %s255_s13  ;;  %s1193_s26 = scalar_lea.vmem %s1563_s12, 128 }
  0x3d   : > { %1060 = vmatprep.subr.bf16.mxu0 %v1265_v14  ;;  %v1076_v55 = vpack.c.bf16 %v609_v54, %v608_v52  ;;  %v1079_v58 = vpack.c.bf16 %v611_v57, %v610_v56  ;;  %v612_v59 = vld [vmem:[%s1605_s2 + $0x30] sm:$0xff]  ;;  %v613_v60 = vld [vmem:[%s1605_s2 + $0x38] sm:$0xff]  ;;  %v614_v62 = vld [vmem:[%s1605_s2 + $0x40] sm:$0xff]  ;;  %p1194_p6 = scmp.ne.s32.totalorder %s1563_s12, %s1193_s26  ;;  %p1620_p9 = scmp.ne.s32.totalorder %s1613_s7, 0 }
  0x3e   : > { %v1082_v61 = vpack.c.bf16 %v613_v60, %v612_v59  ;;  %v615_v63 = vld [vmem:[%s1605_s2 + $0x48] sm:$0xff]  ;;  %v367_v5 = vld [vmem:[#allocation2 + $0x20] sm:$0xff]  ;;  %v369_v9 = vld [vmem:[#allocation2 + $0x30] sm:$0xff]  ;;  %s1268_s25 = smov [#allocation5]  }
  0x3f   : > { %920 = vmatmul.mubr.msk.f32.vlgmr.msra.gmra.mrb[0].mxu0 %vm283_vm0, %v1417_v13  ;;  %v1085_v1 = vpack.c.bf16 %v615_v63, %v614_v62  ;;  %v368_v6 = vld [vmem:[#allocation2 + $0x28] sm:$0xff]  ;;  %v370_v10 = vld [vmem:[#allocation2 + $0x38] sm:$0xff]  ;;  %v712_v46 = vld [vmem:[%s1604_s1 + $0x10] sm:$0xff]  ;;  %v791_v63 = vand.u32 127, %v273_v15  ;;  %p1195_p10 = pnand %p1194_p6, %p1620_p9  ;;  %s1197_s28 = sshll.u32 %s1268_s25, 4  ;;  %s1198_s28 = int_to_ptr.vmem [resolvable:$false] %s1197_s28 }
  0x40   : > { %986 = vmatprep.mubr.msk.f32.mxu0 %vm1266_vm1, %v1264_v0  ;;  %1062 = vmatpush3.bf16.msra.mxu0 %v1061_v47  ;;  %v713_v47 = vld [vmem:[%s1604_s1 + $0x28] sm:$0xff]  ;;  %v710_v57 = vld [vmem:[%s1606_s3 + $0x5] ss:$0 sm:$0xff]  ;;  %s1199_s29 = scalar_lea.vmem %s1198_s28, 256  ;;  %p1200_p2 = scmp.lt.s32.totalorder %s1563_s12, %s1198_s28 }
  0x41   : > { %1063 = vmatprep.subr.bf16.mxu0 %v1265_v14  ;;  %v1097_v48 = vpack.c.bf16 %v713_v47, %v712_v46  ;;  %p1196_p12 = pneg %p1195_p10  ;;  %p1201_p3 = scmp.lt.s32.totalorder %s1199_s29, %s1193_s26 }
  0x43   : > { %p1202_p4 = por %p1201_p3, %p1200_p2 }
  0x44   : > { %1065 = vmatpush3.bf16.msra.mxu0 %v1064_v49  ;;  %v715_v49 = vld [vmem:[%s1604_s1 + $0x58] sm:$0xff] }
  0x45   : > { %1066 = vmatprep.subr.bf16.mxu0 %v1265_v14  ;;  %p1203_p7 = pnand %p1202_p4, %p1196_p12 }
 0x112   : > { %v353_v20 = vpop.f32.mrb[0].mxu0 }
 0x113   : > { %v355_v21 = vpop.f32.mrb[1].mxu0  ;;  %v354_v35 = vadd.f32 %v353_v20, %v276_v34  ;;  %v616_v20 = vld [vmem:[%s1605_s2 + $0x50] sm:$0xff] }
 0x114   : > { %v1434_v24 = vadd.f32 %v355_v21, %v280_v19  ;;  %v617_v21 = vld [vmem:[%s1605_s2 + $0x58] sm:$0xff] }
 0x116   : > { %v362_v25 = vmul.f32 %v358_v22, %v1434_v24  ;;  %v363_v26 = vmul.f32 %v359_v23, %v1434_v24  ;;  %v364_v30 = vmul.f32 %v360_v28, %v1434_v24  ;;  %v365_v31 = vmul.f32 %v361_v29, %v1434_v24  ;;  %v618_v23 = vld [vmem:[%s1605_s2 + $0x60] sm:$0xff] }
 0x117   : > { %v371_v7 = vmul.f32 %v367_v5, %v1434_v24  ;;  %v372_v8 = vmul.f32 %v368_v6, %v1434_v24  ;;  %v373_v17 = vmul.f32 %v369_v9, %v1434_v24  ;;  %v374_v18 = vmul.f32 %v370_v10, %v1434_v24  ;;  %v619_v24 = vld [vmem:[%s1605_s2 + $0x68] sm:$0xff] }
 0x118   : > { %v1055_v27 = vpack.c.bf16 %v363_v26, %v362_v25  ;;  %v1058_v33 = vpack.c.bf16 %v365_v31, %v364_v30  ;;  %v1088_v22 = vpack.c.bf16 %v617_v21, %v616_v20  ;;  %v1091_v25 = vpack.c.bf16 %v619_v24, %v618_v23  ;;  %v620_v26 = vld [vmem:[%s1605_s2 + $0x70] sm:$0xff]  ;;  %v818_v21 = vld [vmem:[%s1606_s3 + $0x2] ss:$0 sm:$0xff] }
 0x119   : > { %v1067_v12 = vpack.c.bf16 %v372_v8, %v371_v7  ;;  %v1070_v19 = vpack.c.bf16 %v374_v18, %v373_v17  ;;  %v1267_v9 = vmov 0  }
 0x11a   : > { %1056 = vmatpush3.bf16.xpose.msra.mxu1 %v1055_v27  ;;  %v621_v27 = vld [vmem:[%s1605_s2 + $0x78] sm:$0xff]  ;;  %1158 = vset.pattern.permute.xlu0 %v1267_v9 }
 0x11b   : > { %1057 = vmatprep.subr.bf16.mxu1 %v1265_v14  ;;  %v1094_v28 = vpack.c.bf16 %v621_v27, %v620_v26 }
 0x122   : > { %1059 = vmatpush3.bf16.xpose.msra.mxu1 %v1058_v33 }
 0x123   : > { %1072 = vmatprep.subr.bf16.mxu1 %v1265_v14 }
 0x129   : > { %976 = vmatmul.mubr.f32.vlgmr.msra.gmra.mrb[0].mxu1 %v354_v35  ;;  %v622_v35 = vld [vmem:[%s1606_s3 + $0x3] ss:$0 sm:$0xff] }
 0x12a   : > { %1032 = vmatprep.mubr.msk.f32.mxu1 %vm1266_vm1, %v1264_v0  ;;  %1074 = vmatpush3.bf16.msra.mxu1 %v1073_v53 }
 0x12b   : > { %1075 = vmatprep.subr.bf16.mxu1 %v1265_v14 }
 0x12e   : > { %1077 = vmatpush3.bf16.msra.mxu1 %v1076_v55  ;;  %v708_v55 = vld [vmem:[%s1606_s3 + $0x4] ss:$0 sm:$0xff] }
 0x12f   : > { %1078 = vmatprep.subr.bf16.mxu1 %v1265_v14 }
 0x132   : > { %1080 = vmatpush3.bf16.msra.mxu1 %v1079_v58 }
 0x133   : > { %1081 = vmatprep.subr.bf16.mxu1 %v1265_v14 }
 0x136   : > { %1083 = vmatpush3.bf16.msra.mxu1 %v1082_v61 }
 0x137   : > { %1084 = vmatprep.subr.bf16.mxu1 %v1265_v14 }
 0x13a   : > { %1086 = vmatpush3.bf16.msra.mxu1 %v1085_v1 }
 0x13b   : > { %1087 = vmatprep.subr.bf16.mxu1 %v1265_v14 }
 0x13e   : > { %1089 = vmatpush3.bf16.msra.mxu1 %v1088_v22 }
 0x13f   : > { %1090 = vmatprep.subr.bf16.mxu1 %v1265_v14 }
 0x142   : > { %1092 = vmatpush3.bf16.msra.mxu1 %v1091_v25 }
 0x143   : > { %1093 = vmatprep.subr.bf16.mxu1 %v1265_v14 }
 0x146   : > { %1095 = vmatpush3.bf16.msra.mxu1 %v1094_v28 }
 0x1fc   : > { %v442_v37 = vpop.f32.mrb[0].mxu1 }
 0x1fd   : > { %v443_v38 = vadd.f32 %v442_v37, %v375_v36  ;;  %v977_v39 = vpop.f32.mrb[1].mxu1 }
 0x1ff   : > { %v446_v41 = vmul.f32 0.35355338, %v443_v38 }
 0x201   : > { %v449_v42 = vadd.f32 %v921_v40, %v446_v41 }
 0x203   : > { %v450_v43 = vsel %vm283_vm0, %v449_v42, -inf }
 0x204   : > { %451 = vmax.xlane.f32.xlu0 %v450_v43 }
 0x291   : > { %v452_v2 = vpop.xlane.xlu0 %451 }
 0x292   : > { %v453_v3 = vsub.f32 %v449_v42, %v452_v2 }
 0x294   : > { %v454_v4 = vmul.f32 1.442695, %v453_v3 }
 0x296   : > { %1159 = vpow2.f32 %v454_v4 }
 0x2a0   : > { %v1160_v11 = vpop.eup %1159 }
 0x2a1   : > { %987 = vmatmul.mubr.msk.f32.vlgmr.msra.gmra.mrb[2].mxu0 %vm283_vm0, %v1160_v11 }
 0x2a2   : > { %1068 = vmatpush3.bf16.msra.mxu0 %v1067_v12  ;;  %997 = vmatprep.mubr.msk.f32.mxu0 %vm1266_vm1, %v1264_v0 }
 0x2a3   : > { %1069 = vmatprep.subr.bf16.mxu0 %v1265_v14 }
 0x2a6   : > { %1071 = vmatpush3.bf16.msra.mxu0 %v1070_v19 }
 0x2a7   : > { %1096 = vmatprep.subr.bf16.mxu0 %v1265_v14 }
 0x2a9   : > { %998 = vmatmul.mubr.msk.f32.vlgmr.msra.gmra.mrb[4].mxu0 %vm283_vm0, %v1160_v11 }
 0x2aa   : > { %1043 = vmatprep.mubr.msk.f32.mxu0 %vm1266_vm1, %v1264_v0  ;;  %1098 = vmatpush3.bf16.msra.mxu0 %v1097_v48 }
 0x2ab   : > { %1099 = vmatprep.subr.bf16.mxu0 %v1265_v14  ;;  %v716_v14 = vld [vmem:[%s1606_s3 + $0x1] ss:$0 sm:$0xff] }
 0x374   : > { %v530_v29 = vpop.f32.mrb[2].mxu0 }
 0x375   : > { %1161 = vrcp.f32 %v530_v29  ;;  %v988_v30 = vpop.f32.mrb[3].mxu0 }
 0x37c   : > { %v600_v31 = vpop.f32.mrb[4].mxu0 }
 0x37d   : > { %v999_v32 = vpop.f32.mrb[5].mxu0 }
 0x37f   : > { %v1162_v33 = vpop.eup %1161 }
 0x380   : > { %v605_v34 = vmul.f32 %v1162_v33, %v600_v31 }
 0x382   : > { %1033 = vmatmul.mubr.f32.vlgmr.msra.gmra.mrb[2].mxu1 %v605_v34 }
 0x455   : > { %v689_v36 = vpop.f32.mrb[2].mxu1 }
 0x456   : > { %v690_v37 = vadd.f32 %v689_v36, %v622_v35  ;;  %v1034_v38 = vpop.f32.mrb[3].mxu1 }
 0x458   : > { %v693_v39 = vadd.f32 %v690_v37, %v1417_v13  ;;  %v714_v13 = vld [vmem:[%s1604_s1 + $0x40] sm:$0xff] }
 0x459   : > { %v1100_v50 = vpack.c.bf16 %v715_v49, %v714_v13 }
 0x45a   : > { %v694_v40 = vsel %vm283_vm0, %v693_v39, 0.0 }
 0x45b   : > { %695 = vadd.xlane.f32.xlu0 %v694_v40  ;;  %1101 = vmatpush3.bf16.msra.mxu0 %v1100_v50 }
 0x4e8   : > { %v696_v41 = vpop.xlane.xlu0 %695 }
 0x4e9   : > { %v698_v42 = vmul.f32 0.03125, %v696_v41 }
 0x4eb   : > { %v699_v43 = vsub.f32 %v693_v39, %v698_v42 }
 0x4ed   : > { %v700_v44 = vmul.f32 %v699_v43, %v699_v43 }
 0x4ef   : > { %v701_v45 = vsel %vm283_vm0, %v700_v44, 0.0 }
 0x4f0   : > { %702 = vadd.xlane.f32.xlu1 %v701_v45 }
 0x57d   : > { %v703_v51 = vpop.xlane.xlu1 %702 }
 0x57e   : > { %v704_v52 = vmul.f32 0.03125, %v703_v51 }
 0x580   : > { %v705_v53 = vadd.f32 1e-05, %v704_v52 }
 0x582   : > { %1163 = vrsqrt.f32 %v705_v53 }
 0x58c   : > { %v1164_v54 = vpop.eup %1163 }
 0x58d   : > { %v707_v56 = vmul.f32 %v1164_v54, %v699_v43 }
 0x58f   : > { %v709_v58 = vmul.f32 %v708_v55, %v707_v56 }
 0x591   : > { %v711_v59 = vadd.f32 %v710_v57, %v709_v58 }
 0x593   : > { %1044 = vmatmul.mubr.msk.f32.vlgmr.msra.gmra.mrb[6].mxu0 %vm283_vm0, %v711_v59 }
 0x666   : > { %v786_v60 = vpop.f32.mrb[6].mxu0 }
 0x667   : > { %v787_v61 = vadd.f32 %v786_v60, %v716_v14  ;;  %v1045_v62 = vpop.f32.mrb[7].mxu0 }
 0x669   : > { %792 = vmax.xlane.f32.xlu1 %v787_v61 }
 0x6f6   : > { %v793_v1 = vpop.xlane.xlu1 %792 }
 0x6f7   : > { %vm794_vm2 = vcmp.eq.f32.partialorder %v787_v61, %v793_v1 }
 0x6f8   : > { %v795_v2 = vsel %vm794_vm2, %v791_v63, 128 }
 0x6f9   : > { %v797_v3 = vshra.s32 %v795_v2, 16  ;;  %v796_v5 = vand.u32 65535, %v795_v2 }
 0x6fb   : > { %v799_v4 = vcvt.s32.f32 %v797_v3  ;;  %v798_v7 = vcvt.s32.f32 %v796_v5 }
 0x6fd   : > { %800 = vmin.xlane.f32.xlu0 %v799_v4 }
 0x78a   : > { %v801_v6 = vpop.xlane.xlu0 %800 }
 0x78b   : > { %vm802_vm3 = vcmp.eq.f32.partialorder %v799_v4, %v801_v6  ;;  %v807_v10 = vcvt.f32.s32 %v801_v6 }
 0x78c   : > { %v803_v8 = vsel %vm802_vm3, %v798_v7, inf }
 0x78d   : > { %804 = vmin.xlane.f32.xlu1 %v803_v8  ;;  %v808_v12 = vshll.u32 %v807_v10, 16 }
 0x81a   : > { %v805_v11 = vpop.xlane.xlu1 %804 }
 0x81b   : > { %v806_v15 = vcvt.f32.s32 %v805_v11 }
 0x81d   : > { %v809_v17 = vadd.s32 %v808_v12, %v806_v15 }
 0x81f   : > { %vm810_vm4 = vcmp.eq.s32.totalorder %v809_v17, 1 }
 0x820   : > { %v925_v18 = vsel %vm810_vm4, 1.0, %v1264_v0 }
 0x821   : > { %v813_v19 = vrot.slane %v925_v18, 7 }
 0x823   : > { %v817_v20 = vsel %vm816_vm5, %v813_v19, 0.0 }
 0x824   : > { %821 = vperm.xlu0 %1158, %v817_v20  }
 0x8a3   : > { %v822_v22 = vpop.permute.xlu0 %821 }
 0x8a4   : > { %v824_v23 = vmul.f32 %v822_v22, %v818_v21 }
 0x8a6   : > { %v825_v24 = vadd.f32 %v824_v23, %v787_v61 }
 0x8a8   : > { %826 = vst [vmem:[%s257_s16] sm:$0xff] %v825_v24 }
 0x8a9   : > { %1206 = shalt.err (!%p1203_p7)
}
 0x8aa   : > { %s1207_s10 = scalar_lea.hbm %s1561_s19, 128  ;;  %s1211_s11 = scalar_lea.hbm %s1609_s6, 256 }
 0x8ab   : > { %p1208_p8 = scmp.ne.s32.totalorder %s1561_s19, %s1207_s10  ;;  %p1212_p1 = scmp.lt.u32.totalorder %s1561_s19, %s1609_s6 }
 0x8ac   : > { %p1213_p0 = scmp.lt.u32.totalorder %s1211_s11, %s1207_s10  ;;  %p1215_p6 = scmp.lt.u32.totalorder %s1207_s10, %s1561_s19 }
 0x8ad   : > { %p1209_p11 = pnand %p1208_p8, %p1620_p9 }
 0x8ae   : > { %p1214_p5 = por %p1213_p0, %p1212_p1 }
 0x8af   : > { %p1210_p13 = pneg %p1209_p11 }
 0x8b0   : > { %p1216_p10 = por %p1215_p6, %p1214_p5 }
 0x8b2   : > { %p1217_p12 = pnand %p1216_p10, %p1210_p13 }
 0x8b4   : > { %1220 = shalt.err (!%p1217_p12)
}
 0x8b5   : > { %1106 = dma.vmem_to_hbm [thread:$0]  (%p1620_p9), %s1563_s12, 128, %s1561_s19, %s828_s20  }
 0x8b6 PF: > { %p1118_p2 = scmp.ge.s32.totalorder %s1259_s24, 2  ;;  %s853_s16 = sand.u32 1, %s1247_s21  }
 0x8b7   : > { %p1621_p3 = scmp.ne.s32.totalorder %s1614_s8, 0  ;;  %s854_s17 = scalar_lea.sflag [#allocation4], %s853_s16 }
 0x8b9   : > { %p1113_p4 = pnand %p1118_p2, %p1621_p3 }
 0x8bb   : > { %1242 = dma.done.wait (!%p1113_p4), %s854_s17, 128  }
 0x8bc   : > { %1244 = vsyncadd (!%p1113_p4), %s854_s17, 4294967168  ;;  %p17_p7 = scmp.ge.s32.totalorder %s1329_s27, 4   ;;  %s1622_s21 = smov %s1251_s22 }
 0x8bd   : > { %s1623_s22 = smov %s1255_s23  ;;  %s1624_s23 = smov %s1340_s30 }
 0x8be   : > { %s1625_s24 = smov %s1329_s27  ;;  %19 = sbr.rel (!%p17_p7) target bundleno = 4 (0x4), region = 87 }
 0x8c5   :  { %859 = vsyncpa [#allocation3], 1 }
 0x8c6   :  { %861 = vsyncpa [#allocation3 + $0x1], 1 }
 0x8c7   :  { %862 = vsyncpa [#allocation4], 1 }
 0x8c8   :  { %864 = vsyncpa [#allocation4 + $0x1], 1 }

</bundles_post_ra>
